<compile_context>
chip_gen: v7x
topology: tpu7x:2x2x1
jax: 0.10.0
libtpu: 0.0.40
codegen_flags: <defaults>
</compile_context>

<pallas_src>
import jax
import jax.numpy as jnp
from jax.experimental import pallas as pl
from jax.experimental.pallas import tpu as pltpu

LANES = 128


def _gish_kernel(x_ref, o_ref):
    # gish(x) = x * log(2 - exp(-exp(x)))  — exact PyTorch formula, f32 math.
    x = x_ref[...].astype(jnp.float32)
    y = x * jnp.log(2.0 - jnp.exp(-jnp.exp(x)))
    o_ref[...] = y.astype(o_ref.dtype)


def _sublanes_for(dtype) -> int:
    # f32 -> 8, bf16/f16 -> 16, int8/fp8 -> 32 (sub-32-bit packs along sublanes).
    itemsize = jnp.dtype(dtype).itemsize
    return max(8, 32 // max(itemsize, 1))


def _chip_profile():
    """Return (is_v7x, default_tile_rows); conservative fallback if unknown."""
    kind = ""
    try:
        kind = jax.devices()[0].device_kind.lower()
    except Exception:
        pass
    is_v7x = ("v7" in kind) or ("7x" in kind)
    # v7x: 8192-row f32 blocks = 4 MiB each, 16 MiB double-buffered in+out,
    # fits the 32 MiB scoped-VMEM default.  v5e/v6e: 4096 rows (8 MiB
    # pipelined) stays under v5e's 16 MiB default and is already on the
    # >=85%-of-roofline plateau.
    return is_v7x, (8192 if is_v7x else 4096)


def _gish_2d(x2d, *, tile_rows, is_v7x, pad_was_needed):
    rows, lanes = x2d.shape
    dtype = x2d.dtype
    sub = _sublanes_for(dtype)

    if rows <= tile_rows:
        tr = rows                                   # full-array block: always legal
    else:
        tr = max(sub, (tile_rows // sub) * sub)     # multiple of sublane packing
    grid_len = pl.cdiv(rows, tr)

    # Megacore split: v7x only (2 TCs).  >= 4 grid steps so each core gets
    # >= 2 pipelined steps and block DMA stays overlapped.
    if is_v7x and grid_len < 4 and rows >= 4 * sub:
        tr = max(sub, (rows // (4 * sub)) * sub)
        grid_len = pl.cdiv(rows, tr)

    n_padded = rows * lanes
    itemsize = jnp.dtype(dtype).itemsize
    cost = pl.CostEstimate(
        flops=2 * n_padded,                       # mul + subtraction
        transcendentals=3 * n_padded,             # exp, exp, log per element
        bytes_accessed=2 * n_padded * itemsize,   # read x + write out
    )

    compiler_params = pltpu.CompilerParams(
        dimension_semantics=("parallel",),
        # Let the (rare) pad producer fuse into the operand DMA instead of
        # materializing a padded HBM copy.
        allow_input_fusion=[True] if pad_was_needed else None,
    )

    return pl.pallas_call(
        _gish_kernel,
        out_shape=jax.ShapeDtypeStruct((rows, lanes), dtype),
        grid_spec=pltpu.PrefetchScalarGridSpec(
            num_scalar_prefetch=0,
            grid=(grid_len,),
            in_specs=[pl.BlockSpec((tr, lanes), lambda i: (i, 0))],
            out_specs=pl.BlockSpec((tr, lanes), lambda i: (i, 0)),
        ),
        compiler_params=compiler_params,
        cost_estimate=cost,
    )(x2d)


def gish(x: jax.Array, *, tile_rows: int | None = None) -> jax.Array:
    """Elementwise Gish activation. Any shape; same shape/dtype out."""
    orig_shape = x.shape
    n = x.size
    if n == 0:
        return x

    is_v7x, default_tr = _chip_profile()
    if tile_rows is None:
        tile_rows = default_tr

    if n % LANES == 0:
        # Zero-copy fast path: contiguous reshape to a lane-dense slab; the
        # ragged row count is absorbed by a partial (masked) last block.
        rows = n // LANES
        out2d = _gish_2d(jnp.reshape(x, (rows, LANES)),
                         tile_rows=tile_rows, is_v7x=is_v7x,
                         pad_was_needed=False)
        return jnp.reshape(out2d, orig_shape)

    # Ragged fallback: pad only to the next lane boundary (<=127 elems of
    # padding); the pad fuses into the operand via allow_input_fusion, the
    # output keeps one residual [:n] slice.
    n_pad = (-n) % LANES
    rows = (n + n_pad) // LANES
    x_flat = jnp.pad(jnp.reshape(x, (-1,)), (0, n_pad))
    out2d = _gish_2d(jnp.reshape(x_flat, (rows, LANES)),
                     tile_rows=tile_rows, is_v7x=is_v7x,
                     pad_was_needed=True)
    return jnp.reshape(jnp.reshape(out2d, (-1,))[:n], orig_shape)


def gish_reference(x: jax.Array) -> jax.Array:
    # Matches the PyTorch module: x * log(2 - exp(-exp(x)))
    xf = x.astype(jnp.float32)
    return (xf * jnp.log(2.0 - jnp.exp(-jnp.exp(xf)))).astype(x.dtype)


if __name__ == "__main__":
    key = jax.random.PRNGKey(0)
    # NCHW, matching the PyTorch convention for conv-net activations.
    x = jax.random.normal(key, (2, 4, 16, 16), dtype=jnp.float32)

    out = jax.block_until_ready(gish(x))
    ref = gish_reference(x)
    assert out.shape == x.shape and out.dtype == x.dtype
    assert jnp.allclose(out, ref, atol=1e-5, rtol=1e-5), "mismatch vs reference"

    # Also exercise the ragged (n % 128 != 0) fallback path once.
    x2 = jax.random.normal(jax.random.PRNGKey(1), (3, 5, 7, 11), dtype=jnp.float32)
    out2 = jax.block_until_ready(gish(x2))
    assert jnp.allclose(out2, gish_reference(x2), atol=1e-5, rtol=1e-5), "mismatch (ragged)"

    print("KERNEL_OK")
</pallas_src>

<mosaic_0001>
module attributes {stable_mosaic.version = 11 : i64} {
  func.func @_gish_kernel(%arg0: i32, %arg1: memref<16x128xf32, #tpu.memory_space<vmem>>, %arg2: memref<16x128xf32, #tpu.memory_space<vmem>>) attributes {dimension_semantics = [#tpu.dimension_semantics<parallel>], iteration_bounds = array<i64: 1>, scalar_prefetch = 0 : i64, scratch_operands = 0 : i64, tpu.core_type = #tpu.core_type<tc>, window_params = [{transform_indices = @transform_0, window_bounds = array<i64: 16, 128>}, {transform_indices = @transform_1, window_bounds = array<i64: 16, 128>}]} {
    %c0 = arith.constant 0 : index
    %c0_0 = arith.constant 0 : index
    %0 = vector.load %arg1[%c0, %c0_0] : memref<16x128xf32, #tpu.memory_space<vmem>>, vector<16x128xf32>
    %1 = math.exp %0 : vector<16x128xf32>
    %cst = arith.constant 0.000000e+00 : f32
    %2 = vector.broadcast %cst : f32 to vector<16x128xf32>
    %3 = arith.subf %2, %1 : vector<16x128xf32>
    %4 = math.exp %3 : vector<16x128xf32>
    %cst_1 = arith.constant 2.000000e+00 : f32
    %5 = vector.broadcast %cst_1 : f32 to vector<16x128xf32>
    %6 = arith.subf %5, %4 : vector<16x128xf32>
    %7 = math.log %6 : vector<16x128xf32>
    %8 = arith.mulf %0, %7 : vector<16x128xf32>
    %c0_2 = arith.constant 0 : index
    %c0_3 = arith.constant 0 : index
    %9 = vector.load %arg2[%c0_2, %c0_3] : memref<16x128xf32, #tpu.memory_space<vmem>>, vector<16x128xf32>
    tpu.vector_store %arg2[%c0_2, %c0_3], %8 {strides = array<i32>} : memref<16x128xf32, #tpu.memory_space<vmem>>, vector<16x128xf32>,
    return
  }
  func.func @transform_0(%arg0: i32) -> (i32, i32) {
    %c0_i32 = arith.constant 0 : i32
    %c0_i32_0 = arith.constant 0 : i32
    return %arg0, %c0_i32 : i32, i32
  }
  func.func @transform_1(%arg0: i32) -> (i32, i32) {
    %c0_i32 = arith.constant 0 : i32
    %c0_i32_0 = arith.constant 0 : i32
    return %arg0, %c0_i32 : i32, i32
  }
}

</mosaic_0001>

<bundles_post_ra>
// kernel: tpu_custom_call.1
= control target key start
LH: loop header
LB: loop body
LE: loop exit
PB: predicated region body
PF: predicated region fallthrough
CT: control target
= control target key end

     0   :  { %6 = vsyncpa [#allocation3], 0  ;;  %s170_s0 = inlined_call_operand.hbm [shape: f32[16,128], index: 0, kind: input, shape index: {}]   ;;  %s171_s1 = inlined_call_operand.hbm [shape: f32[16,128], index: 1, kind: output, shape index: {}]  }
   0x1   :  { %7 = vsyncpa [#allocation4], 0  ;;  %s126_s6 = smov [#allocation2]   ;;  %s78_s10 = scalar_lea.hbm %s170_s0, 256 }
   0x2   :  { %s13_s7 = sshll.u32 %s126_s6, 4  ;;  %p79_p0 = scmp.ne.s32.totalorder %s170_s0, %s78_s10  ;;  %s14_s7 = int_to_ptr.vmem [resolvable:$true] %s13_s7 }
   0x3   :  { %p82_p1 = scmp.lt.u32.totalorder %s78_s10, %s170_s0 }
   0x5   :  { %p84_p2 = pnand %p82_p1, %p79_p0 }
   0x7   :  { %87 = shalt.err (!%p84_p2)
}
   0x8   :  { %s88_s15 = scalar_lea.vmem %s14_s7, 256  ;;  %p93_p4 = scmp.lt.s32.totalorder %s14_s7, %s14_s7 }
   0x9   :  { %p89_p3 = scmp.ne.s32.totalorder %s14_s7, %s88_s15  ;;  %p94_p5 = scmp.lt.s32.totalorder %s88_s15, %s88_s15 }
   0xb   :  { %p95_p6 = por %p94_p5, %p93_p4 }
   0xd   :  { %p96_p7 = pnand %p95_p6, %p89_p3 }
   0xf   :  { %99 = shalt.err (!%p96_p7)
}
  0x10   :  { %s127_s16 = smov 128   ;;  %s128_s17 = smov 8  }
  0x11   :  { %19 = dma.hbm_to_vmem [thread:$0]  %s170_s0, 256, %s14_s7, [#allocation3], %s127_s16, %s127_s16, %s128_s17  }
  0x12   :  { %122 = dma.done.wait [#allocation3], 256  }
  0x13   :  { %123 = vsyncadd [#allocation3], 4294967040  ;;  %v23_v0 = vld [vmem:[#allocation2] sm:$0xff]  ;;  %v24_v1 = vld [vmem:[#allocation2 + $0x8] sm:$0xff]  ;;  %s129_s0 = smov [#allocation5]  }
  0x14   :  { %v25_v2 = vmul.f32 1.442695, %v23_v0  ;;  %v27_v3 = vmul.f32 1.442695, %v24_v1  ;;  %s50_s20 = sshll.u32 %s129_s0, 4  ;;  %s51_s20 = int_to_ptr.vmem [resolvable:$true] %s50_s20 }
  0x15   :  { %s100_s21 = scalar_lea.vmem %s51_s20, 256  ;;  %p105_p9 = scmp.lt.s32.totalorder %s51_s20, %s51_s20 }
  0x16   :  { %66 = vpow2.f32 %v25_v2  ;;  %p101_p8 = scmp.ne.s32.totalorder %s51_s20, %s100_s21  ;;  %p106_p10 = scmp.lt.s32.totalorder %s100_s21, %s100_s21 }
  0x17   :  { %68 = vpow2.f32 %v27_v3 }
  0x18   :  { %p107_p11 = por %p106_p10, %p105_p9 }
  0x1a   :  { %p108_p12 = pnand %p107_p11, %p101_p8 }
  0x20   :  { %v67_v4 = vpop.eup %66 }
  0x21   :  { %v69_v5 = vpop.eup %68  ;;  %v29_v6 = vsub.f32 0.0, %v67_v4 }
  0x22   :  { %v30_v7 = vsub.f32 0.0, %v69_v5 }
  0x23   :  { %v31_v8 = vmul.f32 1.442695, %v29_v6 }
  0x24   :  { %v33_v9 = vmul.f32 1.442695, %v30_v7 }
  0x25   :  { %70 = vpow2.f32 %v31_v8 }
  0x26   :  { %72 = vpow2.f32 %v33_v9 }
  0x2f   :  { %v71_v10 = vpop.eup %70 }
  0x30   :  { %v73_v11 = vpop.eup %72  ;;  %v35_v12 = vsub.f32 2.0, %v71_v10 }
  0x31   :  { %v36_v13 = vsub.f32 2.0, %v73_v11 }
  0x32   :  { %74 = vlog2.f32 %v35_v12 }
  0x33   :  { %76 = vlog2.f32 %v36_v13 }
  0x3c   :  { %v75_v14 = vpop.eup %74 }
  0x3d   :  { %v77_v15 = vpop.eup %76  ;;  %v38_v16 = vmul.f32 0.6931472, %v75_v14 }
  0x3e   :  { %v40_v17 = vmul.f32 0.6931472, %v77_v15 }
  0x3f   :  { %v41_v18 = vmul.f32 %v38_v16, %v23_v0 }
  0x40   :  { %v42_v19 = vmul.f32 %v40_v17, %v24_v1 }
  0x41   :  { %43 = vst [vmem:[#allocation5] sm:$0xff] %v41_v18 }
  0x42   :  { %44 = vst [vmem:[#allocation5 + $0x8] sm:$0xff] %v42_v19 }
  0x43   :  { %111 = shalt.err (!%p108_p12)
}
  0x44   :  { %s112_s24 = scalar_lea.hbm %s171_s1, 256 }
  0x45   :  { %p113_p13 = scmp.ne.s32.totalorder %s171_s1, %s112_s24  ;;  %p116_p0 = scmp.lt.u32.totalorder %s112_s24, %s171_s1 }
  0x47   :  { %p118_p1 = pnand %p116_p0, %p113_p13 }
  0x49   :  { %121 = shalt.err (!%p118_p1)
}
  0x4a   :  { %56 = dma.vmem_to_hbm [thread:$0]  %s51_s20, 256, %s171_s1, [#allocation4], %s127_s16, %s127_s16, %s128_s17  }
  0x4b   :  { %124 = dma.done.wait [#allocation4], 256  }
  0x4c   :  { %125 = vsyncadd [#allocation4], 4294967040 }
  0x4d   :  { %60 = vsyncpa [#allocation3], 1 }
  0x4e   :  { %61 = vsyncpa [#allocation4], 1 }

</bundles_post_ra>
